<compile_context>
chip_gen: v7x
topology: tpu7x:2x2x1
jax: 0.10.0
libtpu: 0.0.40
codegen_flags: <defaults>
</compile_context>

<pallas_src>
import jax
import jax.numpy as jnp
from jax.experimental import pallas as pl
from jax.experimental.pallas import tpu as pltpu


_X_BLOCK_BUDGET = 2 * 1024 * 1024      # target bytes for one x block in VMEM
_VMEM_LIMIT = 48 * 1024 * 1024         # scoped VMEM limit (safe on v5e/v6e/v7x)


# ----------------------------------------------------------------------------
# frequency / coefficient tables (glue, precomputed in plain JAX)
# ----------------------------------------------------------------------------
def _make_freqs(n_pos: int, dq: int, base: int):
    freq_seq = jnp.arange(dq, dtype=jnp.float32)
    inv_freq = 1.0 / (float(base) ** (freq_seq / dq))
    t = jnp.arange(n_pos, dtype=jnp.float32)
    freqs = t[:, None] * inv_freq[None, :]          # (n_pos, dq)
    return jnp.sin(freqs), jnp.cos(freqs)


def _make_axis_tables(pos_len, dq, base, n_heads, head_dim, axis_idx, n_axes,
                      own_tail, dtype):
    """Full-width coefficient tables for one positional axis.

    Returns (cos_t, sin_neg_t, sin_pos_t), each (pos_len, n_heads*head_dim).
    Per head block of `head_dim` features:
      slots [2a*dq, (2a+1)*dq)   "first of pair"  -> cos ;  -sin in sin_neg
      slots [(2a+1)*dq,(2a+2)*dq) "second of pair" -> cos ;  +sin in sin_pos
      tail slots [2*n_axes*dq, head_dim)           -> cos = 1 iff own_tail
      all other slots                              -> 0
    Kernel:  out = x*Σcos + x[j+dq]*Σsin_neg + x[j-dq]*Σsin_pos .
    """
    sin, cos = _make_freqs(pos_len, dq, base)
    zeros = jnp.zeros_like(cos)
    rot = 2 * n_axes * dq
    tail = head_dim - rot
    cos_parts, sn_parts, sp_parts = [], [], []
    for a in range(n_axes):
        if a == axis_idx:
            cos_parts += [cos, cos]
            sn_parts += [-sin, zeros]
            sp_parts += [zeros, sin]
        else:
            cos_parts += [zeros, zeros]
            sn_parts += [zeros, zeros]
            sp_parts += [zeros, zeros]
    if tail > 0:
        tail_cos = (jnp.ones if own_tail else jnp.zeros)((pos_len, tail),
                                                         jnp.float32)
        tail_zero = jnp.zeros((pos_len, tail), jnp.float32)
        cos_parts.append(tail_cos)
        sn_parts.append(tail_zero)
        sp_parts.append(tail_zero)
    cos_row = jnp.concatenate(cos_parts, axis=-1)    # (pos_len, head_dim)
    sn_row = jnp.concatenate(sn_parts, axis=-1)
    sp_row = jnp.concatenate(sp_parts, axis=-1)
    reps = (1, n_heads)
    return (jnp.tile(cos_row, reps).astype(dtype),
            jnp.tile(sn_row, reps).astype(dtype),
            jnp.tile(sp_row, reps).astype(dtype))


# ----------------------------------------------------------------------------
# Pallas kernel (shared for 1D / 2D / 3D)
# ----------------------------------------------------------------------------
def _make_rope_kernel(n_axes: int, shift: int):
    def kernel(*refs):
        x_ref, o_ref = refs[0], refs[-1]
        tab_refs = refs[1:-1]
        x = x_ref[...].astype(jnp.float32)
        feat = x.shape[-1]
        # Lane-axis rotations giving each slot its pair partner; wrap-around
        # across head boundaries always lands where the sin tables are zero.
        x_dn = jnp.concatenate([x[..., shift:], x[..., :shift]], axis=-1)
        x_up = jnp.concatenate([x[..., feat - shift:], x[..., :feat - shift]],
                               axis=-1)
        cos_t = tab_refs[0][...].astype(jnp.float32)
        sn_t = tab_refs[1][...].astype(jnp.float32)
        sp_t = tab_refs[2][...].astype(jnp.float32)
        for a in range(1, n_axes):
            cos_t = cos_t + tab_refs[3 * a][...].astype(jnp.float32)
            sn_t = sn_t + tab_refs[3 * a + 1][...].astype(jnp.float32)
            sp_t = sp_t + tab_refs[3 * a + 2][...].astype(jnp.float32)
        out = x * cos_t + x_dn * sn_t + x_up * sp_t
        o_ref[...] = out.astype(o_ref.dtype)
    return kernel


def _choose_leading_tile(n, row_bytes, align=1):
    """Largest tile of the leading positional axis with block <= budget."""
    if n * row_bytes <= _X_BLOCK_BUDGET:
        return n
    t = max(1, _X_BLOCK_BUDGET // row_bytes)
    if align > 1:
        t = max(align, (t // align) * align)
    return int(min(n, t))


def _compiler_params():
    return pltpu.CompilerParams(
        dimension_semantics=("parallel", "parallel"),
        vmem_limit_bytes=_VMEM_LIMIT)


# ----------------------------------------------------------------------------
# wrappers (free reshapes only; no transposes, no tail concatenation)
# ----------------------------------------------------------------------------
def apply_1d_rotary_pos_emb(x, base=10000):
    B, S, Hh, D = x.shape
    half = D // 2
    if half == 0:
        return x
    F = Hh * D
    itemsize = x.dtype.itemsize
    xr = x.reshape(B, S, F)                           # free (contiguous)
    cos_t, sn_t, sp_t = _make_axis_tables(S, half, base, Hh, D, 0, 1, True,
                                          x.dtype)
    s_tile = _choose_leading_tile(S, F * itemsize, align=8)
    grid = (pl.cdiv(S, s_tile), B)

    x_spec = pl.BlockSpec((1, s_tile, F), lambda si, b: (b, si, 0))
    t_spec = pl.BlockSpec((s_tile, F), lambda si, b: (si, 0))
    out = pl.pallas_call(
        _make_rope_kernel(1, half),
        out_shape=jax.ShapeDtypeStruct((B, S, F), x.dtype),
        grid=grid,
        in_specs=[x_spec, t_spec, t_spec, t_spec],
        out_specs=x_spec,
        compiler_params=_compiler_params(),
    )(xr, cos_t, sn_t, sp_t)
    return out.reshape(B, S, Hh, D)


def apply_2d_rotary_pos_emb(x, base=10000):
    B, H, W, Hh, D = x.shape
    dq = D // 4
    if dq == 0:
        return x
    F = Hh * D
    itemsize = x.dtype.itemsize
    xr = x.reshape(B, H, W, F)                        # free (contiguous)
    ch, snh, sph = _make_axis_tables(H, dq, base, Hh, D, 0, 2, True, x.dtype)
    cw, snw, spw = _make_axis_tables(W, dq, base, Hh, D, 1, 2, False, x.dtype)
    # H tables get a singleton W axis so broadcasting is rank-aligned in-kernel.
    ch, snh, sph = (t[:, None, :] for t in (ch, snh, sph))
    h_tile = _choose_leading_tile(H, W * F * itemsize)
    grid = (pl.cdiv(H, h_tile), B)

    x_spec = pl.BlockSpec((1, h_tile, W, F), lambda hi, b: (b, hi, 0, 0))
    th_spec = pl.BlockSpec((h_tile, 1, F), lambda hi, b: (hi, 0, 0))
    tw_spec = pl.BlockSpec((W, F), lambda hi, b: (0, 0))
    out = pl.pallas_call(
        _make_rope_kernel(2, dq),
        out_shape=jax.ShapeDtypeStruct((B, H, W, F), x.dtype),
        grid=grid,
        in_specs=[x_spec, th_spec, th_spec, th_spec, tw_spec, tw_spec, tw_spec],
        out_specs=x_spec,
        compiler_params=_compiler_params(),
    )(xr, ch, snh, sph, cw, snw, spw)
    return out.reshape(B, H, W, Hh, D)


def apply_3d_rotary_pos_emb(x, base=10000):
    B, H, W, Dp, Hh, dm = x.shape
    dq = dm // 6
    if dq == 0:
        return x
    F = Hh * dm
    itemsize = x.dtype.itemsize
    xr = x.reshape(B, H, W, Dp, F)                    # free (contiguous)
    ch, snh, sph = _make_axis_tables(H, dq, base, Hh, dm, 0, 3, True, x.dtype)
    cw, snw, spw = _make_axis_tables(W, dq, base, Hh, dm, 1, 3, False, x.dtype)
    cd, snd, spd = _make_axis_tables(Dp, dq, base, Hh, dm, 2, 3, False, x.dtype)
    ch, snh, sph = (t[:, None, None, :] for t in (ch, snh, sph))
    cw, snw, spw = (t[:, None, :] for t in (cw, snw, spw))
    h_tile = _choose_leading_tile(H, W * Dp * F * itemsize)
    grid = (pl.cdiv(H, h_tile), B)

    x_spec = pl.BlockSpec((1, h_tile, W, Dp, F), lambda hi, b: (b, hi, 0, 0, 0))
    th_spec = pl.BlockSpec((h_tile, 1, 1, F), lambda hi, b: (hi, 0, 0, 0))
    tw_spec = pl.BlockSpec((W, 1, F), lambda hi, b: (0, 0, 0))
    td_spec = pl.BlockSpec((Dp, F), lambda hi, b: (0, 0))
    out = pl.pallas_call(
        _make_rope_kernel(3, dq),
        out_shape=jax.ShapeDtypeStruct((B, H, W, Dp, F), x.dtype),
        grid=grid,
        in_specs=[x_spec,
                  th_spec, th_spec, th_spec,
                  tw_spec, tw_spec, tw_spec,
                  td_spec, td_spec, td_spec],
        out_specs=x_spec,
        compiler_params=_compiler_params(),
    )(xr, ch, snh, sph, cw, snw, spw, cd, snd, spd)
    return out.reshape(B, H, W, Dp, Hh, dm)


def rot_emb_forward(x, base=10000):
    """Matches RotEmb.forward dispatch: dims = len(x.shape[1:-2])."""
    dims = len(x.shape[1:-2])
    if dims == 1:
        return apply_1d_rotary_pos_emb(x, base)
    elif dims == 2:
        return apply_2d_rotary_pos_emb(x, base)
    elif dims == 3:
        return apply_3d_rotary_pos_emb(x, base)
    else:
        print("Failed to apply rotary emb")
        return x


# ----------------------------------------------------------------------------
# pure-JAX references (for correctness check only)
# ----------------------------------------------------------------------------
def _ref_1d(x, base=10000):
    B, S, Hh, D = x.shape
    rot = (D // 2) * 2
    half = rot // 2
    sin, cos = _make_freqs(S, half, base)
    sin = sin[None, :, None, :]
    cos = cos[None, :, None, :]
    x1, x2 = x[..., :half], x[..., half:rot]
    out = jnp.concatenate([x1 * cos - x2 * sin, x1 * sin + x2 * cos], -1)
    return jnp.concatenate([out, x[..., rot:]], -1)


def _ref_2d(x, base=10000):
    B, Hsp, Wsp, Hh, D = x.shape
    rot = (D // 4) * 4
    dq = rot // 4
    sh, ch = _make_freqs(Hsp, dq, base)
    sw, cw = _make_freqs(Wsp, dq, base)
    sh = sh[None, :, None, None, :]; ch = ch[None, :, None, None, :]
    sw = sw[None, None, :, None, :]; cw = cw[None, None, :, None, :]
    h1 = x[..., :dq]; h2 = x[..., dq:2 * dq]
    w1 = x[..., 2 * dq:3 * dq]; w2 = x[..., 3 * dq:4 * dq]
    out = jnp.concatenate([h1 * ch - h2 * sh, h1 * sh + h2 * ch,
                           w1 * cw - w2 * sw, w1 * sw + w2 * cw], -1)
    return jnp.concatenate([out, x[..., rot:]], -1)


def _ref_3d(x, base=10000):
    B, Hsp, Wsp, Dsp, Hh, dm = x.shape
    rot = (dm // 6) * 6
    dq = rot // 6
    sh, ch = _make_freqs(Hsp, dq, base)
    sw, cw = _make_freqs(Wsp, dq, base)
    sd, cd = _make_freqs(Dsp, dq, base)
    sh = sh[None, :, None, None, None, :]; ch = ch[None, :, None, None, None, :]
    sw = sw[None, None, :, None, None, :]; cw = cw[None, None, :, None, None, :]
    sd = sd[None, None, None, :, None, :]; cd = cd[None, None, None, :, None, :]
    h1 = x[..., :dq]; h2 = x[..., dq:2 * dq]
    w1 = x[..., 2 * dq:3 * dq]; w2 = x[..., 3 * dq:4 * dq]
    d1 = x[..., 4 * dq:5 * dq]; d2 = x[..., 5 * dq:6 * dq]
    out = jnp.concatenate([h1 * ch - h2 * sh, h1 * sh + h2 * ch,
                           w1 * cw - w2 * sw, w1 * sw + w2 * cw,
                           d1 * cd - d2 * sd, d1 * sd + d2 * cd], -1)
    return jnp.concatenate([out, x[..., rot:]], -1)


# ----------------------------------------------------------------------------
if __name__ == "__main__":
    key = jax.random.PRNGKey(0)
    k1, k2, k3, k4 = jax.random.split(key, 4)

    # 1D: (batch, seq, heads, dim)           -> folded feature width 4*32 = 128
    x1 = jax.random.normal(k1, (2, 8, 4, 32), dtype=jnp.float32)
    # 2D: (batch, H, W, heads, dim), dim % 4 == 0
    x2 = jax.random.normal(k2, (2, 4, 4, 2, 16), dtype=jnp.float32)
    # 2D with rot < dim tail (dim=18 -> rot=16, 2 passthrough channels)
    x2b = jax.random.normal(k4, (2, 4, 4, 2, 18), dtype=jnp.float32)
    # 3D: (batch, H, W, D, heads, dim), dim % 6 == 0
    x3 = jax.random.normal(k3, (2, 4, 4, 4, 2, 12), dtype=jnp.float32)

    y1 = jax.block_until_ready(rot_emb_forward(x1))
    y2 = jax.block_until_ready(rot_emb_forward(x2))
    y2b = jax.block_until_ready(rot_emb_forward(x2b))
    y3 = jax.block_until_ready(rot_emb_forward(x3))

    assert y1.shape == x1.shape and y2.shape == x2.shape
    assert y2b.shape == x2b.shape and y3.shape == x3.shape
    assert jnp.allclose(y1, _ref_1d(x1), atol=1e-5, rtol=1e-5)
    assert jnp.allclose(y2, _ref_2d(x2), atol=1e-5, rtol=1e-5)
    assert jnp.allclose(y2b, _ref_2d(x2b), atol=1e-5, rtol=1e-5)
    assert jnp.allclose(y3, _ref_3d(x3), atol=1e-5, rtol=1e-5)

    print("KERNEL_OK")
</pallas_src>

<mosaic_0001>
module attributes {stable_mosaic.version = 11 : i64} {
  func.func @kernel(%arg0: i32, %arg1: i32, %arg2: memref<1x8x128xf32, #tpu.memory_space<vmem>>, %arg3: memref<8x128xf32, #tpu.memory_space<vmem>>, %arg4: memref<8x128xf32, #tpu.memory_space<vmem>>, %arg5: memref<8x128xf32, #tpu.memory_space<vmem>>, %arg6: memref<1x8x128xf32, #tpu.memory_space<vmem>>) attributes {dimension_semantics = [#tpu.dimension_semantics<parallel>, #tpu.dimension_semantics<parallel>], iteration_bounds = array<i64: 1, 2>, scalar_prefetch = 0 : i64, scratch_operands = 0 : i64, tpu.core_type = #tpu.core_type<tc>, window_params = [{transform_indices = @transform_0, window_bounds = array<i64: 1, 8, 128>}, {transform_indices = @transform_1, window_bounds = array<i64: 8, 128>}, {transform_indices = @transform_2, window_bounds = array<i64: 8, 128>}, {transform_indices = @transform_3, window_bounds = array<i64: 8, 128>}, {transform_indices = @transform_4, window_bounds = array<i64: 1, 8, 128>}]} {
    %c0 = arith.constant 0 : index
    %c0_0 = arith.constant 0 : index
    %c0_1 = arith.constant 0 : index
    %0 = vector.load %arg2[%c0, %c0_0, %c0_1] : memref<1x8x128xf32, #tpu.memory_space<vmem>>, vector<1x8x128xf32>
    %1 = vector.extract_strided_slice %0 {offsets = [0, 0, 16], sizes = [1, 8, 112], strides = [1, 1, 1]} : vector<1x8x128xf32> to vector<1x8x112xf32>
    %2 = vector.extract_strided_slice %0 {offsets = [0, 0, 0], sizes = [1, 8, 16], strides = [1, 1, 1]} : vector<1x8x128xf32> to vector<1x8x16xf32>
    %3 = tpu.concatenate %1, %2 in 2 : vector<1x8x112xf32>, vector<1x8x16xf32> -> vector<1x8x128xf32>
    %4 = vector.extract_strided_slice %0 {offsets = [0, 0, 112], sizes = [1, 8, 16], strides = [1, 1, 1]} : vector<1x8x128xf32> to vector<1x8x16xf32>
    %5 = vector.extract_strided_slice %0 {offsets = [0, 0, 0], sizes = [1, 8, 112], strides = [1, 1, 1]} : vector<1x8x128xf32> to vector<1x8x112xf32>
    %6 = tpu.concatenate %4, %5 in 2 : vector<1x8x16xf32>, vector<1x8x112xf32> -> vector<1x8x128xf32>
    %c0_2 = arith.constant 0 : index
    %c0_3 = arith.constant 0 : index
    %7 = vector.load %arg3[%c0_2, %c0_3] : memref<8x128xf32, #tpu.memory_space<vmem>>, vector<8x128xf32>
    %c0_4 = arith.constant 0 : index
    %c0_5 = arith.constant 0 : index
    %8 = vector.load %arg4[%c0_4, %c0_5] : memref<8x128xf32, #tpu.memory_space<vmem>>, vector<8x128xf32>
    %c0_6 = arith.constant 0 : index
    %c0_7 = arith.constant 0 : index
    %9 = vector.load %arg5[%c0_6, %c0_7] : memref<8x128xf32, #tpu.memory_space<vmem>>, vector<8x128xf32>
    %10 = vector.shape_cast %7 : vector<8x128xf32> to vector<1x8x128xf32>
    %11 = arith.mulf %0, %10 : vector<1x8x128xf32>
    %12 = vector.shape_cast %8 : vector<8x128xf32> to vector<1x8x128xf32>
    %13 = arith.mulf %3, %12 : vector<1x8x128xf32>
    %14 = arith.addf %11, %13 : vector<1x8x128xf32>
    %15 = vector.shape_cast %9 : vector<8x128xf32> to vector<1x8x128xf32>
    %16 = arith.mulf %6, %15 : vector<1x8x128xf32>
    %17 = arith.addf %14, %16 : vector<1x8x128xf32>
    %c0_8 = arith.constant 0 : index
    %c0_9 = arith.constant 0 : index
    %c0_10 = arith.constant 0 : index
    %18 = vector.load %arg6[%c0_8, %c0_9, %c0_10] : memref<1x8x128xf32, #tpu.memory_space<vmem>>, vector<1x8x128xf32>
    tpu.vector_store %arg6[%c0_8, %c0_9, %c0_10], %17 {strides = array<i32>} : memref<1x8x128xf32, #tpu.memory_space<vmem>>, vector<1x8x128xf32>,
    return
  }
  func.func @transform_0(%arg0: i32, %arg1: i32) -> (i32, i32, i32) {
    %c0_i32 = arith.constant 0 : i32
    %c0_i32_0 = arith.constant 0 : i32
    return %arg1, %arg0, %c0_i32 : i32, i32, i32
  }
  func.func @transform_1(%arg0: i32, %arg1: i32) -> (i32, i32) {
    %c0_i32 = arith.constant 0 : i32
    %c0_i32_0 = arith.constant 0 : i32
    return %arg0, %c0_i32 : i32, i32
  }
  func.func @transform_2(%arg0: i32, %arg1: i32) -> (i32, i32) {
    %c0_i32 = arith.constant 0 : i32
    %c0_i32_0 = arith.constant 0 : i32
    return %arg0, %c0_i32 : i32, i32
  }
  func.func @transform_3(%arg0: i32, %arg1: i32) -> (i32, i32) {
    %c0_i32 = arith.constant 0 : i32
    %c0_i32_0 = arith.constant 0 : i32
    return %arg0, %c0_i32 : i32, i32
  }
  func.func @transform_4(%arg0: i32, %arg1: i32) -> (i32, i32, i32) {
    %c0_i32 = arith.constant 0 : i32
    %c0_i32_0 = arith.constant 0 : i32
    return %arg1, %arg0, %c0_i32 : i32, i32, i32
  }
}

</mosaic_0001>

<bundles_post_ra>
// kernel: tpu_custom_call.1
= control target key start
LH: loop header
LB: loop body
LE: loop exit
PB: predicated region body
PF: predicated region fallthrough
CT: control target
= control target key end

     0   :  { %9 = vsyncpa [#allocation3], 0  ;;  %s990_s0 = inlined_call_operand.hbm [shape: f32[2,8,128], index: 0, kind: input, shape index: {}]   ;;  %s991_s1 = inlined_call_operand.hbm [shape: f32[8,128], index: 1, kind: input, shape index: {}]   ;;  %s992_s2 = inlined_call_operand.hbm [shape: f32[8,128], index: 2, kind: input, shape index: {}]   ;;  %s993_s3 = inlined_call_operand.vmem [shape: f32[8,128], index: 3, kind: input, shape index: {}]   ;;  %s994_s4 = inlined_call_operand.hbm [shape: f32[2,8,128], index: 4, kind: output, shape index: {}]  }
   0x1   :  { %11 = vsyncpa [#allocation3 + $0x1], 0 }
   0x2   :  { %12 = vsyncpa [#allocation6], 0 }
   0x3   :  { %13 = vsyncpa [#allocation4], 0 }
   0x4   :  { %15 = vsyncpa [#allocation4 + $0x1], 0  ;;  %s744_s15 = smov 0   ;;  %s746_s16 = smov 0  }
   0x5   :  { %s748_s17 = smov 0   ;;  %s750_s18 = smov 0  }
   0x6   :  { %s752_s19 = smov 0   ;;  %s754_s20 = smov 0  }
   0x7 LB: > { %s436_s21 = sadd.s32 4294967295, %s711_s20   ;;  %s437_s22 = sadd.s32 4294967294, %s711_s20   ;;  %s711_s20 = sphi %s754_s20, %s21_s20   ;;  %s707_s19 = sphi %s752_s19, %s1017_s19   ;;  %s703_s18 = sphi %s750_s18, %s1016_s18   ;;  %s699_s17 = sphi %s748_s17, %s1015_s17   ;;  %s695_s16 = sphi %s746_s16, %s1014_s16   ;;  %s691_s15 = sphi %s744_s15, %s1013_s15  }
   0x8   : > { %p55_p0 = scmp.ne.s32.totalorder %s695_s16, %s691_s15  ;;  %p778_p1 = scmp.eq.s32.totalorder %s436_s21, 0 }
   0x9   : > { %p782_p2 = scmp.eq.s32.totalorder %s436_s21, 1  ;;  %p165_p3 = scmp.eq.s32.totalorder %s437_s22, 1 }
   0xa   : > { %s999_s23 = scalar_select %p778_p1, 1, 0 }
   0xb   : > { %s1000_s24 = scalar_select %p782_p2, 1, 0 }
   0xc   : > { %p788_p4 = por %p778_p1, %p55_p0  ;;  %p438_p5 = scmp.ge.s32.totalorder %s711_s20, 1 }
   0xd   : > { %p793_p6 = por %p165_p3, %p55_p0  ;;  %p172_p7 = scmp.lt.s32.totalorder %s711_s20, 3 }
   0xe   : > { %s1001_s25 = scalar_select %p788_p4, 1, 0 }
   0xf   : > { %s1002_s26 = scalar_select %p793_p6, 1, 0 }
  0x10   : > { %p798_p8 = pnand %p438_p5, %p172_p7  ;;  %s713_s28 = smov [#allocation5]  }
  0x11   : > { %s187_s29 = sshll.u32 %s713_s28, 4  ;;  %s714_s30 = smov [#allocation7]   ;;  %s188_s29 = int_to_ptr.vmem [resolvable:$true] %s187_s29 }
  0x12   : > { %s1003_s27 = scalar_select %p798_p8, 1, 0 }
  0x13   : > { %p466_p10 = pneg %p798_p8  ;;  %s200_s5 = sshll.u32 %s714_s30, 4  ;;  %s811_s5 = int_to_ptr.vmem [resolvable:$true] %s200_s5 }
  0x14   : > { %s539_s9 = scalar_lea.hbm %s991_s1, 128 }
  0x15   : > { %p807_p11 = pnand %p466_p10, %p778_p1  ;;  %p540_p12 = scmp.ne.s32.totalorder %s991_s1, %s539_s9 }
  0x16   : > { %p546_p5 = scmp.lt.u32.totalorder %s539_s9, %s991_s1 }
  0x17   : > { %p541_p13 = pneg %p807_p11 }
  0x19   : > { %p542_p0 = pnand %p541_p13, %p540_p12 }
  0x1b   : > { %p543_p3 = pneg %p542_p0 }
  0x1d   : > { %p548_p7 = pnand %p546_p5, %p543_p3 }
  0x1f   : > { %551 = shalt.err (!%p548_p7)
}
  0x20   : > { %s552_s14 = scalar_lea.vmem %s188_s29, 128  ;;  %p560_p1 = scmp.lt.s32.totalorder %s188_s29, %s188_s29 }
  0x21   : > { %p553_p10 = scmp.ne.s32.totalorder %s188_s29, %s552_s14  ;;  %p561_p4 = scmp.lt.s32.totalorder %s552_s14, %s552_s14 }
  0x23   : > { %p555_p9 = pnand %p553_p10, %p541_p13  ;;  %p562_p8 = por %p561_p4, %p560_p1 }
  0x25   : > { %p556_p6 = pneg %p555_p9 }
  0x27   : > { %p563_p2 = pnand %p562_p8, %p556_p6 }
  0x29   : > { %566 = shalt.err (!%p563_p2)
}
  0x2a   : > { %469 = dma.hbm_to_vmem [thread:$0]  (!%p807_p11), %s991_s1, 128, %s188_s29, [#allocation6]  }
  0x2b   : > { %s567_s7 = scalar_lea.hbm %s992_s2, 128 }
  0x2c   : > { %p568_p9 = scmp.ne.s32.totalorder %s992_s2, %s567_s7  ;;  %p574_p2 = scmp.lt.u32.totalorder %s567_s7, %s992_s2 }
  0x2e   : > { %p570_p1 = pnand %p568_p9, %p541_p13 }
  0x30   : > { %p571_p4 = pneg %p570_p1 }
  0x32   : > { %p576_p6 = pnand %p574_p2, %p571_p4 }
  0x34   : > { %579 = shalt.err (!%p576_p6)
}
  0x35   : > { %s580_s29 = scalar_lea.vmem %s811_s5, 128  ;;  %p588_p3 = scmp.lt.s32.totalorder %s811_s5, %s811_s5 }
  0x36   : > { %p581_p8 = scmp.ne.s32.totalorder %s811_s5, %s580_s29  ;;  %p589_p5 = scmp.lt.s32.totalorder %s580_s29, %s580_s29 }
  0x38   : > { %p583_p12 = pnand %p581_p8, %p541_p13  ;;  %p590_p7 = por %p589_p5, %p588_p3 }
  0x3a   : > { %p584_p0 = pneg %p583_p12 }
  0x3c   : > { %p591_p10 = pnand %p590_p7, %p584_p0 }
  0x3e   : > { %594 = shalt.err (!%p591_p10)
}
  0x3f   : > { %472 = dma.hbm_to_vmem [thread:$0]  (!%p807_p11), %s992_s2, 128, %s811_s5, [#allocation6]  }
  0x40   : > { %s30_s14 = sadd.s32 1, %s707_s19  ;;  %s42_s21 = sadd.s32 1, %s699_s17 }
  0x41   : > { %p31_p13 = scmp.ge.s32.totalorder %s30_s14, 2  ;;  %p49_p9 = scmp.ne.s32.totalorder %s699_s17, %s695_s16 }
  0x42   : > { %p50_p1 = scmp.eq.s32.totalorder %s711_s20, 0  ;;  %p483_p4 = scmp.lt.s32.totalorder %s711_s20, 2 }
  0x43   : > { %s1019_s14 = smov (%p31_p13, %s30_s14), 0  ;;  %p1005_p6 = scmp.ne.s32.totalorder %s1000_s24, 0 }
  0x44   : > { %p51_p2 = por %p50_p1, %p49_p9  ;;  %s37_s22 = ssub.s32 %s707_s19, %s1019_s14 }
  0x45   : > { %p870_p8 = por %p1005_p6, %p49_p9  ;;  %s218_s28 = sand.u32 1, %s699_s17  }
  0x46   : > { %p40_p12 = scmp.eq.s32.totalorder %s37_s22, 0  ;;  %s443_s5 = sshll.u32 %s218_s28, 3 }
  0x47   : > { %s444_s30 = sshll.u32 %s707_s19, 7  ;;  %s222_s24 = scalar_lea.vmem [#allocation2], %s443_s5 }
  0x48   : > { %s879_s7 = scalar_select %p40_p12, %s699_s17, %s42_s21  }
  0x49   : > { %s884_s10 = scalar_lea.hbm %s990_s0, %s444_s30  ;;  %s230_s11 = sshll.u32 %s222_s24, 4  ;;  %s892_s11 = int_to_ptr.vmem [resolvable:$true] %s230_s11 }
  0x4a   : > { %p888_p11 = pnand %p483_p4, %p51_p2  ;;  %s219_s12 = scalar_lea.sflag [#allocation3], %s218_s28 }
  0x4b   : > { %s595_s13 = scalar_lea.hbm %s884_s10, 128  ;;  %s600_s5 = scalar_lea.hbm %s990_s0, 256 }
  0x4c   : > { %p596_p0 = scmp.ne.s32.totalorder %s884_s10, %s595_s13  ;;  %p597_p3 = pneg %p888_p11 }
  0x4d   : > { %p601_p10 = scmp.lt.u32.totalorder %s884_s10, %s990_s0  ;;  %p602_p13 = scmp.lt.u32.totalorder %s600_s5, %s595_s13 }
  0x4e   : > { %p598_p5 = pnand %p597_p3, %p596_p0  ;;  %p604_p1 = scmp.lt.u32.totalorder %s595_s13, %s884_s10 }
  0x4f   : > { %p603_p9 = por %p602_p13, %p601_p10 }
  0x50   : > { %p599_p7 = pneg %p598_p5 }
  0x51   : > { %p605_p4 = por %p604_p1, %p603_p9 }
  0x53   : > { %p606_p2 = pnand %p605_p4, %p599_p7 }
  0x55   : > { %609 = shalt.err (!%p606_p2)
}
  0x56   : > { %s610_s28 = scalar_lea.vmem %s892_s11, 128  ;;  %s715_s9 = smov [#allocation2]  }
  0x57   : > { %p611_p6 = scmp.ne.s32.totalorder %s892_s11, %s610_s28  ;;  %s615_s24 = sshll.u32 %s715_s9, 4  ;;  %s616_s24 = int_to_ptr.vmem [resolvable:$false] %s615_s24 }
  0x58   : > { %s617_s21 = scalar_lea.vmem %s616_s24, 256  ;;  %p618_p5 = scmp.lt.s32.totalorder %s892_s11, %s616_s24 }
  0x59   : > { %p613_p12 = pnand %p611_p6, %p597_p3  ;;  %p619_p10 = scmp.lt.s32.totalorder %s617_s21, %s610_s28 }
  0x5b   : > { %p614_p0 = pneg %p613_p12  ;;  %p620_p13 = por %p619_p10, %p618_p5 }
  0x5d   : > { %p621_p9 = pnand %p620_p13, %p614_p0 }
  0x5f   : > { %624 = shalt.err (!%p621_p9)
}
  0x60   : > { %476 = dma.hbm_to_vmem [thread:$0]  (!%p888_p11), %s884_s10, 128, %s892_s11, %s219_s12  }
  0x61   : > { %p1008_p7 = scmp.ne.s32.totalorder %s1003_s27, 0 }
  0x62   : > { %s922_s13 = sand.u32 (!%p1008_p7), 1, %s695_s16   ;;  %p1009_p3 = scmp.ne.s32.totalorder (!%p1008_p7), %s1001_s25, 0 }
  0x63   : > { %239 = sbr.rel (%p1008_p7) target bundleno = 248 (0xf8), region = 36  ;;  %s446_s22 = sshll.u32 (!%p1008_p7), %s922_s13, 3 }
  0x64   : > { %s242_s5 = scalar_lea.sflag (!%p1008_p7), [#allocation3], %s922_s13  ;;  %s245_s30 = scalar_lea.vmem (!%p1008_p7), [#allocation2], %s446_s22 }
  0x6a   : > { %678 = dma.done.wait (%p1009_p3), %s242_s5, 128  }
  0x6b   : > { %680 = vsyncadd (%p1009_p3), %s242_s5, 4294967168  ;;  %p1010_p1 = scmp.ne.s32.totalorder %s999_s23, 0 }
  0x6d   : > { %682 = dma.done.wait (%p1010_p1), [#allocation6], 256  }
  0x6e   : > { %684 = vsyncadd (%p1010_p1), [#allocation6], 4294967040  ;;  %v286_v0 = vld [vmem:[%s245_s30] sm:$0xff]  ;;  %s716_s27 = smov 112   ;;  %s717_s10 = smov 16   ;;  %v294_v1 = vld [vmem:[#allocation5] sm:$0xff] }
  0x6f   : > { %288 = vrot.lane.b32.xlu0 %v286_v0, %s716_s27  ;;  %v295_v2 = vld [vmem:[#allocation7] sm:$0xff]  ;;  %v297_v4 = vmul.f32 %v294_v1, %v286_v0  ;;  %v296_v6 = vld [vmem:[%s993_s3] sm:$0xff]  ;;  %s451_s23 = sshll.u32 %s703_s18, 7  ;;  %s281_s29 = scalar_lea.vmem [#allocation8], %s446_s22 }
  0x70   : > { %s318_s12 = sshll.u32 %s281_s29, 4  ;;  %s941_s9 = scalar_lea.hbm %s994_s4, %s451_s23  ;;  %s943_s12 = int_to_ptr.vmem [resolvable:$true] %s318_s12 }
  0x71   : > { %s304_s24 = scalar_lea.sflag [#allocation4], %s922_s13  ;;  %s625_s21 = scalar_lea.vmem %s943_s12, 128 }
  0x72   : > { %p626_p11 = scmp.ne.s32.totalorder %s943_s12, %s625_s21  ;;  %s718_s18 = smov [#allocation8]  }
  0x73   : > { %291 = vrot.lane.b32.xlu0 %v286_v0, %s717_s10  ;;  %s629_s22 = sshll.u32 %s718_s18, 4  ;;  %s630_s22 = int_to_ptr.vmem [resolvable:$false] %s629_s22 }
  0x74   : > { %p627_p4 = pnand %p626_p11, %p870_p8  ;;  %s631_s5 = scalar_lea.vmem %s630_s22, 256 }
  0x75   : > { %p632_p6 = scmp.lt.s32.totalorder %s943_s12, %s630_s22  ;;  %p633_p12 = scmp.lt.s32.totalorder %s631_s5, %s625_s21 }
  0x76   : > { %p628_p2 = pneg %p627_p4 }
  0x77   : > { %p634_p0 = por %p633_p12, %p632_p6 }
  0x79   : > { %p635_p5 = pnand %p634_p0, %p628_p2 }
  0xe1   : > { %v289_v3 = vpop.permute.xlu0 %288 }
  0xe2   : > { %v298_v5 = vmul.f32 %v295_v2, %v289_v3 }
  0xe4   : > { %v299_v8 = vadd.f32 %v298_v5, %v297_v4 }
  0xe5   : > { %v292_v7 = vpop.permute.xlu0 %291 }
  0xe6   : > { %v300_v9 = vmul.f32 %v296_v6, %v292_v7 }
  0xe8   : > { %v301_v10 = vadd.f32 %v300_v9, %v299_v8 }
  0xea   : > { %302 = vst [vmem:[%s281_s29] sm:$0xff] %v301_v10 }
  0xeb   : > { %638 = shalt.err (!%p635_p5)
}
  0xec   : > { %s639_s13 = scalar_lea.hbm %s941_s9, 128  ;;  %s643_s10 = scalar_lea.hbm %s994_s4, 256 }
  0xed   : > { %p640_p10 = scmp.ne.s32.totalorder %s941_s9, %s639_s13  ;;  %p644_p7 = scmp.lt.u32.totalorder %s941_s9, %s994_s4 }
  0xee   : > { %p645_p3 = scmp.lt.u32.totalorder %s643_s10, %s639_s13  ;;  %p647_p11 = scmp.lt.u32.totalorder %s639_s13, %s941_s9 }
  0xef   : > { %p641_p13 = pnand %p640_p10, %p870_p8 }
  0xf0   : > { %p646_p1 = por %p645_p3, %p644_p7 }
  0xf1   : > { %p642_p9 = pneg %p641_p13 }
  0xf2   : > { %p648_p4 = por %p647_p11, %p646_p1 }
  0xf4   : > { %p649_p2 = pnand %p648_p4, %p642_p9 }
  0xf6   : > { %652 = shalt.err (!%p649_p2)
}
  0xf7   : > { %464 = dma.vmem_to_hbm [thread:$0]  (%p870_p8), %s943_s12, 128, %s941_s9, %s304_s24  }
  0xf8 PF: > { %s330_s23 = sand.u32 1, %s691_s15   ;;  %p1011_p6 = scmp.ne.s32.totalorder %s1002_s26, 0 }
  0xf9   : > { %p1012_p12 = scmp.ge.s32.totalorder %s711_s20, 2  ;;  %s331_s29 = scalar_lea.sflag [#allocation4], %s330_s23 }
  0xfb   : > { %p478_p0 = pnand %p1012_p12, %p1011_p6 }
  0xfd   : > { %686 = dma.done.wait (!%p478_p0), %s331_s29, 128  }
  0xfe   : > { %688 = vsyncadd (!%p478_p0), %s331_s29, 4294967168  ;;  %s21_s20 = sadd.s32 1, %s711_s20   ;;  %s1013_s15 = smov %s695_s16 }
  0xff   : > { %p18_p5 = scmp.ge.s32.totalorder %s21_s20, 4   ;;  %s1014_s16 = smov %s699_s17 }
 0x100   : > { %s1015_s17 = smov %s879_s7  ;;  %s1016_s18 = smov %s707_s19 }
 0x101   : > { %s1017_s19 = smov %s1019_s14  ;;  %20 = sbr.rel (!%p18_p5) target bundleno = 7 (0x7), region = 94 }
 0x108   :  { %336 = vsyncpa [#allocation3], 1 }
 0x109   :  { %338 = vsyncpa [#allocation3 + $0x1], 1 }
 0x10a   :  { %339 = vsyncpa [#allocation6], 1 }
 0x10b   :  { %340 = vsyncpa [#allocation4], 1 }
 0x10c   :  { %342 = vsyncpa [#allocation4 + $0x1], 1 }

</bundles_post_ra>
